<compile_context>
chip_gen: v7x
topology: tpu7x:2x2x1
jax: 0.10.0
libtpu: 0.0.40
codegen_flags: <defaults>
</compile_context>

<pallas_src>
import functools
import math

import jax
import jax.numpy as jnp
from jax.experimental import pallas as pl
from jax.experimental.pallas import tpu as pltpu


def fc_decoder_kernel(z_ref, w1_ref, b1_ref, w2_ref, b2_ref,
                      w3_ref, b3_ref, w4_ref, b4_ref, out_ref,
                      *, latent_dim):
    # ---- layer 1: K = latent_dim is tiny -> VPU outer-product FMAs (f32) ----
    if latent_dim <= 8:
        w1 = w1_ref[...]                               # read once, reuse rows
        z = z_ref[...]
        acc = z[:, 0:1] * w1[0:1, :]                   # (bm,1)*(1,E) -> (bm,E)
        for k in range(1, latent_dim):                 # static unroll
            acc = acc + z[:, k:k + 1] * w1[k:k + 1, :]
    else:
        acc = jnp.dot(z_ref[...], w1_ref[...],
                      preferred_element_type=jnp.float32)
    h = jnp.maximum(acc + b1_ref[...], 0.0)            # f32 bias + ReLU

    # ---- layers 2-4: bf16 operands on the MXU, f32 accumulation ----
    h = jnp.dot(h.astype(jnp.bfloat16), w2_ref[...],
                preferred_element_type=jnp.float32)
    h = jnp.maximum(h + b2_ref[...], 0.0)

    h = jnp.dot(h.astype(jnp.bfloat16), w3_ref[...],
                preferred_element_type=jnp.float32)
    h = jnp.maximum(h + b3_ref[...], 0.0)

    h = jnp.dot(h.astype(jnp.bfloat16), w4_ref[...],
                preferred_element_type=jnp.float32)
    out_ref[...] = (h + b4_ref[...]).astype(out_ref.dtype)


def _round_up(x, m):
    return ((x + m - 1) // m) * m


def _pad2(a, rows, cols, dtype):
    a = jnp.asarray(a)
    return jnp.pad(a, ((0, rows - a.shape[0]),
                       (0, cols - a.shape[1]))).astype(dtype)


@functools.lru_cache(maxsize=1)
def _device_kind():
    try:
        return jax.devices()[0].device_kind.lower()
    except Exception:  # pragma: no cover - defensive (mock/CPU compile)
        return ""


def _select_bm(B):
    """Batch tile: multiple of 8, generation-aware, minimal padding waste."""
    kind = _device_kind()
    B8 = _round_up(max(B, 1), 8)
    if "v7" in kind:
        # 2 TensorCores per chip: aim for >= 2 parallel tiles when B allows.
        if B8 <= 16:
            return B8
        return min(256, _round_up(pl.cdiv(B8, 2), 8))
    if "v5" in kind:
        # 128x128 MXU already saturated at M=128; padding waste hurts most here.
        return min(128, B8)
    # v6e / default: prefer larger tiles (amortize weight pushes & per-step
    # overhead) but never at the price of extra batch-padding writeback.
    best_key, best_bm = None, 8
    for cand in (512, 256, 128):
        bm = min(cand, B8)
        waste = _round_up(B8, bm) - B8
        key = (waste, -bm)
        if best_key is None or key < best_key:
            best_key, best_bm = key, bm
    return best_bm


def prepare_fc_decoder_params(params):
    """Pad feature dims to multiples of 128 lanes and cast the MXU weights to
    bf16 ONCE. Padded weight rows/cols and biases are zero, so padded lanes
    stay exactly 0 through every ReLU and never leak into real outputs."""
    w1 = jnp.asarray(params["w1"], jnp.float32)
    latent_dim, E = w1.shape
    P = jnp.asarray(params["w4"]).shape[1]
    Ep = _round_up(E, 128)
    Pp = _round_up(P, 128)
    return dict(
        latent_dim=latent_dim, E=E, P=P, Ep=Ep, Pp=Pp,
        w1=_pad2(params["w1"], latent_dim, Ep, jnp.float32),  # VPU layer: f32
        b1=_pad2(params["b1"], 1, Ep, jnp.float32),
        w2=_pad2(params["w2"], Ep, Ep, jnp.bfloat16),
        b2=_pad2(params["b2"], 1, Ep, jnp.float32),
        w3=_pad2(params["w3"], Ep, Pp, jnp.bfloat16),
        b3=_pad2(params["b3"], 1, Pp, jnp.float32),
        w4=_pad2(params["w4"], Pp, Pp, jnp.bfloat16),
        b4=_pad2(params["b4"], 1, Pp, jnp.float32),
    )


def fc_decoder(z, prepared, *, bm=None):
    """z: (B, latent_dim) float32. prepared: output of prepare_fc_decoder_params."""
    B, latent_dim = z.shape
    assert latent_dim == prepared["latent_dim"]
    Ep, Pp = prepared["Ep"], prepared["Pp"]
    E, P = prepared["E"], prepared["P"]

    # Batch tiling: multiple of 8 sublanes, generation-aware, minimal waste.
    if bm is None:
        bm = _select_bm(B)
    bm = max(8, min(bm, _round_up(B, 8)))
    B_pad = _round_up(B, bm)

    # Only the (small) activation batch is padded per call.
    zp = z.astype(jnp.float32)
    if B_pad != B:
        zp = jnp.pad(zp, ((0, B_pad - B), (0, 0)))

    rep = lambda i: (0, 0)     # weights/biases: grid-invariant blocks
    grid = (B_pad // bm,)

    flops = 2 * B_pad * (latent_dim * Ep + Ep * Ep + Ep * Pp + Pp * Pp)
    w_bytes = (prepared["w1"].size * 4
               + (prepared["w2"].size + prepared["w3"].size
                  + prepared["w4"].size) * 2)
    b_bytes = (prepared["b1"].size + prepared["b2"].size
               + prepared["b3"].size + prepared["b4"].size) * 4
    bytes_accessed = zp.size * 4 + w_bytes + b_bytes + B_pad * Pp * 4
    cost = pl.CostEstimate(flops=flops, transcendentals=0,
                           bytes_accessed=bytes_accessed)

    # Explicit VMEM budget: double-buffered I/O + weights + live intermediates.
    io_tile_bytes = bm * latent_dim * 4 + bm * Pp * 4
    inter_bytes = 3 * bm * max(Ep, Pp) * 4
    need = 2 * (w_bytes + b_bytes + io_tile_bytes) + inter_bytes
    vmem_limit = int(min(max(need + (8 << 20), 32 << 20), 64 << 20))

    kernel = functools.partial(fc_decoder_kernel, latent_dim=latent_dim)

    # TODO(synk): if enc_out_dim / input_prod_size grow beyond toy sizes,
    # single-buffer the grid-invariant weight specs (pipeline_mode=pl.Buffered(1))
    # and add an N-dim grid axis for layers 3/4 to fit v7x's 64 MiB VMEM.
    out = pl.pallas_call(
        kernel,
        out_shape=jax.ShapeDtypeStruct((B_pad, Pp), jnp.float32),
        grid_spec=pl.GridSpec(
            grid=grid,
            in_specs=[
                pl.BlockSpec((bm, latent_dim), lambda i: (i, 0)),   # z tile
                pl.BlockSpec((latent_dim, Ep), rep),                # w1
                pl.BlockSpec((1, Ep), rep),                         # b1
                pl.BlockSpec((Ep, Ep), rep),                        # w2
                pl.BlockSpec((1, Ep), rep),                         # b2
                pl.BlockSpec((Ep, Pp), rep),                        # w3
                pl.BlockSpec((1, Pp), rep),                         # b3
                pl.BlockSpec((Pp, Pp), rep),                        # w4
                pl.BlockSpec((1, Pp), rep),                         # b4
            ],
            out_specs=pl.BlockSpec((bm, Pp), lambda i: (i, 0)),     # lane-dense
        ),
        compiler_params=pltpu.CompilerParams(
            dimension_semantics=("parallel",),
            vmem_limit_bytes=vmem_limit),
        cost_estimate=cost,
    )(zp, prepared["w1"], prepared["b1"], prepared["w2"], prepared["b2"],
      prepared["w3"], prepared["b3"], prepared["w4"], prepared["b4"])

    # Skip the slice copy when the padded output already matches logical shape.
    if B_pad == B and Pp == P:
        return out
    return out[:B, :P]


def init_linear(key, in_features, out_features):
    """PyTorch nn.Linear default init: U(-1/sqrt(fan_in), 1/sqrt(fan_in))."""
    kw, kb = jax.random.split(key)
    bound = 1.0 / math.sqrt(in_features)
    w = jax.random.uniform(kw, (in_features, out_features), jnp.float32,
                           minval=-bound, maxval=bound)
    b = jax.random.uniform(kb, (1, out_features), jnp.float32,
                           minval=-bound, maxval=bound)
    return w, b


def reference_forward(z, params):
    h = jnp.maximum(z @ params["w1"] + params["b1"], 0.0)
    h = jnp.maximum(h @ params["w2"] + params["b2"], 0.0)
    h = jnp.maximum(h @ params["w3"] + params["b3"], 0.0)
    return h @ params["w4"] + params["b4"]


if __name__ == "__main__":
    # Small shapes consistent with FC_Decoder(input_prod_size, enc_out_dim, latent_dim)
    latent_dim = 2
    enc_out_dim = 32
    input_prod_size = 64

    key = jax.random.PRNGKey(0)
    kz, kz2, k1, k2, k3, k4 = jax.random.split(key, 6)

    w1, b1 = init_linear(k1, latent_dim, enc_out_dim)            # linear_
    w2, b2 = init_linear(k2, enc_out_dim, enc_out_dim)           # fc4
    w3, b3 = init_linear(k3, enc_out_dim, input_prod_size)       # fc5
    w4, b4 = init_linear(k4, input_prod_size, input_prod_size)   # fc6
    params = dict(w1=w1, b1=b1, w2=w2, b2=b2, w3=w3, b3=b3, w4=w4, b4=b4)

    # Pad + cast the weights exactly once (hoisted out of the per-call path).
    prepared = prepare_fc_decoder_params(params)
    jax.block_until_ready(jax.tree_util.tree_leaves(prepared))

    # Test 1: tiny batch (single tile).
    batch = 8
    z = jax.random.normal(kz, (batch, latent_dim), jnp.float32)
    out = jax.block_until_ready(fc_decoder(z, prepared))
    ref = reference_forward(z, params)
    assert out.shape == (batch, input_prod_size)
    assert jnp.allclose(out, ref, atol=3e-2, rtol=3e-2), (
        float(jnp.max(jnp.abs(out - ref))))

    # Test 2: batch not divisible by 8/128 (exercises padding + multi-tile grid).
    batch2 = 300
    z2 = jax.random.normal(kz2, (batch2, latent_dim), jnp.float32)
    out2 = jax.block_until_ready(fc_decoder(z2, prepared))
    ref2 = reference_forward(z2, params)
    assert out2.shape == (batch2, input_prod_size)
    assert jnp.allclose(out2, ref2, atol=3e-2, rtol=3e-2), (
        float(jnp.max(jnp.abs(out2 - ref2))))

    print("KERNEL_OK")
</pallas_src>

<mosaic_0001>
module attributes {stable_mosaic.version = 11 : i64} {
  func.func @fc_decoder_kernel(%arg0: i32, %arg1: memref<8x2xf32, #tpu.memory_space<vmem>>, %arg2: memref<2x128xf32, #tpu.memory_space<vmem>>, %arg3: memref<1x128xf32, #tpu.memory_space<vmem>>, %arg4: memref<128x128xbf16, #tpu.memory_space<vmem>>, %arg5: memref<1x128xf32, #tpu.memory_space<vmem>>, %arg6: memref<128x128xbf16, #tpu.memory_space<vmem>>, %arg7: memref<1x128xf32, #tpu.memory_space<vmem>>, %arg8: memref<128x128xbf16, #tpu.memory_space<vmem>>, %arg9: memref<1x128xf32, #tpu.memory_space<vmem>>, %arg10: memref<8x128xf32, #tpu.memory_space<vmem>>) attributes {dimension_semantics = [#tpu.dimension_semantics<parallel>], iteration_bounds = array<i64: 1>, scalar_prefetch = 0 : i64, scratch_operands = 0 : i64, tpu.core_type = #tpu.core_type<tc>, window_params = [{transform_indices = @transform_0, window_bounds = array<i64: 8, 2>}, {pipeline_mode = #tpu.pipeline_mode<synchronous>, transform_indices = @transform_1, window_bounds = array<i64: 2, 128>}, {pipeline_mode = #tpu.pipeline_mode<synchronous>, transform_indices = @transform_2, window_bounds = array<i64: 1, 128>}, {pipeline_mode = #tpu.pipeline_mode<synchronous>, transform_indices = @transform_3, window_bounds = array<i64: 128, 128>}, {pipeline_mode = #tpu.pipeline_mode<synchronous>, transform_indices = @transform_4, window_bounds = array<i64: 1, 128>}, {pipeline_mode = #tpu.pipeline_mode<synchronous>, transform_indices = @transform_5, window_bounds = array<i64: 128, 128>}, {pipeline_mode = #tpu.pipeline_mode<synchronous>, transform_indices = @transform_6, window_bounds = array<i64: 1, 128>}, {pipeline_mode = #tpu.pipeline_mode<synchronous>, transform_indices = @transform_7, window_bounds = array<i64: 128, 128>}, {pipeline_mode = #tpu.pipeline_mode<synchronous>, transform_indices = @transform_8, window_bounds = array<i64: 1, 128>}, {transform_indices = @transform_9, window_bounds = array<i64: 8, 128>}]} {
    %c0 = arith.constant 0 : index
    %c0_0 = arith.constant 0 : index
    %0 = vector.load %arg2[%c0, %c0_0] : memref<2x128xf32, #tpu.memory_space<vmem>>, vector<2x128xf32>
    %c0_1 = arith.constant 0 : index
    %c0_2 = arith.constant 0 : index
    %1 = vector.load %arg1[%c0_1, %c0_2] : memref<8x2xf32, #tpu.memory_space<vmem>>, vector<8x2xf32>
    %2 = vector.extract_strided_slice %1 {offsets = [0, 0], sizes = [8, 1], strides = [1, 1]} : vector<8x2xf32> to vector<8x1xf32>
    %3 = vector.extract_strided_slice %0 {offsets = [0, 0], sizes = [1, 128], strides = [1, 1]} : vector<2x128xf32> to vector<1x128xf32>
    %4 = vector.broadcast %2 : vector<8x1xf32> to vector<8x128xf32>
    %5 = vector.broadcast %3 : vector<1x128xf32> to vector<8x128xf32>
    %6 = arith.mulf %4, %5 : vector<8x128xf32>
    %7 = vector.extract_strided_slice %1 {offsets = [0, 1], sizes = [8, 1], strides = [1, 1]} : vector<8x2xf32> to vector<8x1xf32>
    %8 = vector.extract_strided_slice %0 {offsets = [1, 0], sizes = [1, 128], strides = [1, 1]} : vector<2x128xf32> to vector<1x128xf32>
    %9 = vector.broadcast %7 : vector<8x1xf32> to vector<8x128xf32>
    %10 = vector.broadcast %8 : vector<1x128xf32> to vector<8x128xf32>
    %11 = arith.mulf %9, %10 : vector<8x128xf32>
    %12 = arith.addf %6, %11 : vector<8x128xf32>
    %c0_3 = arith.constant 0 : index
    %c0_4 = arith.constant 0 : index
    %13 = vector.load %arg3[%c0_3, %c0_4] : memref<1x128xf32, #tpu.memory_space<vmem>>, vector<1x128xf32>
    %14 = vector.broadcast %13 : vector<1x128xf32> to vector<8x128xf32>
    %15 = arith.addf %12, %14 : vector<8x128xf32>
    %cst = arith.constant 0.000000e+00 : f32
    %16 = vector.broadcast %cst : f32 to vector<8x128xf32>
    %17 = arith.maximumf %15, %16 : vector<8x128xf32>
    %18 = arith.truncf %17 : vector<8x128xf32> to vector<8x128xbf16>
    %c0_5 = arith.constant 0 : index
    %c0_6 = arith.constant 0 : index
    %19 = vector.load %arg4[%c0_5, %c0_6] : memref<128x128xbf16, #tpu.memory_space<vmem>>, vector<128x128xbf16>
    %cst_7 = arith.constant dense<0.000000e+00> : vector<8x128xf32>
    %20 = tpu.matmul %18, %19, %cst_7 {dimension_numbers = #tpu.dot_dimension_numbers<[1], [0], [0], [1], [0, 0, 1, 1], [], []>} : vector<8x128xbf16>, vector<128x128xbf16>, vector<8x128xf32> -> vector<8x128xf32>
    %c0_8 = arith.constant 0 : index
    %c0_9 = arith.constant 0 : index
    %21 = vector.load %arg5[%c0_8, %c0_9] : memref<1x128xf32, #tpu.memory_space<vmem>>, vector<1x128xf32>
    %22 = vector.broadcast %21 : vector<1x128xf32> to vector<8x128xf32>
    %23 = arith.addf %20, %22 : vector<8x128xf32>
    %cst_10 = arith.constant 0.000000e+00 : f32
    %24 = vector.broadcast %cst_10 : f32 to vector<8x128xf32>
    %25 = arith.maximumf %23, %24 : vector<8x128xf32>
    %26 = arith.truncf %25 : vector<8x128xf32> to vector<8x128xbf16>
    %c0_11 = arith.constant 0 : index
    %c0_12 = arith.constant 0 : index
    %27 = vector.load %arg6[%c0_11, %c0_12] : memref<128x128xbf16, #tpu.memory_space<vmem>>, vector<128x128xbf16>
    %cst_13 = arith.constant dense<0.000000e+00> : vector<8x128xf32>
    %28 = tpu.matmul %26, %27, %cst_13 {dimension_numbers = #tpu.dot_dimension_numbers<[1], [0], [0], [1], [0, 0, 1, 1], [], []>} : vector<8x128xbf16>, vector<128x128xbf16>, vector<8x128xf32> -> vector<8x128xf32>
    %c0_14 = arith.constant 0 : index
    %c0_15 = arith.constant 0 : index
    %29 = vector.load %arg7[%c0_14, %c0_15] : memref<1x128xf32, #tpu.memory_space<vmem>>, vector<1x128xf32>
    %30 = vector.broadcast %29 : vector<1x128xf32> to vector<8x128xf32>
    %31 = arith.addf %28, %30 : vector<8x128xf32>
    %cst_16 = arith.constant 0.000000e+00 : f32
    %32 = vector.broadcast %cst_16 : f32 to vector<8x128xf32>
    %33 = arith.maximumf %31, %32 : vector<8x128xf32>
    %34 = arith.truncf %33 : vector<8x128xf32> to vector<8x128xbf16>
    %c0_17 = arith.constant 0 : index
    %c0_18 = arith.constant 0 : index
    %35 = vector.load %arg8[%c0_17, %c0_18] : memref<128x128xbf16, #tpu.memory_space<vmem>>, vector<128x128xbf16>
    %cst_19 = arith.constant dense<0.000000e+00> : vector<8x128xf32>
    %36 = tpu.matmul %34, %35, %cst_19 {dimension_numbers = #tpu.dot_dimension_numbers<[1], [0], [0], [1], [0, 0, 1, 1], [], []>} : vector<8x128xbf16>, vector<128x128xbf16>, vector<8x128xf32> -> vector<8x128xf32>
    %c0_20 = arith.constant 0 : index
    %c0_21 = arith.constant 0 : index
    %37 = vector.load %arg9[%c0_20, %c0_21] : memref<1x128xf32, #tpu.memory_space<vmem>>, vector<1x128xf32>
    %38 = vector.broadcast %37 : vector<1x128xf32> to vector<8x128xf32>
    %39 = arith.addf %36, %38 : vector<8x128xf32>
    %c0_22 = arith.constant 0 : index
    %c0_23 = arith.constant 0 : index
    %40 = vector.load %arg10[%c0_22, %c0_23] : memref<8x128xf32, #tpu.memory_space<vmem>>, vector<8x128xf32>
    tpu.vector_store %arg10[%c0_22, %c0_23], %39 {strides = array<i32>} : memref<8x128xf32, #tpu.memory_space<vmem>>, vector<8x128xf32>,
    return
  }
  func.func @transform_0(%arg0: i32) -> (i32, i32) {
    %c0_i32 = arith.constant 0 : i32
    %c0_i32_0 = arith.constant 0 : i32
    return %arg0, %c0_i32 : i32, i32
  }
  func.func @transform_1(%arg0: i32) -> (i32, i32) {
    %c0_i32 = arith.constant 0 : i32
    %c0_i32_0 = arith.constant 0 : i32
    %c0_i32_1 = arith.constant 0 : i32
    return %c0_i32, %c0_i32_0 : i32, i32
  }
  func.func @transform_2(%arg0: i32) -> (i32, i32) {
    %c0_i32 = arith.constant 0 : i32
    %c0_i32_0 = arith.constant 0 : i32
    %c0_i32_1 = arith.constant 0 : i32
    return %c0_i32, %c0_i32_0 : i32, i32
  }
  func.func @transform_3(%arg0: i32) -> (i32, i32) {
    %c0_i32 = arith.constant 0 : i32
    %c0_i32_0 = arith.constant 0 : i32
    %c0_i32_1 = arith.constant 0 : i32
    return %c0_i32, %c0_i32_0 : i32, i32
  }
  func.func @transform_4(%arg0: i32) -> (i32, i32) {
    %c0_i32 = arith.constant 0 : i32
    %c0_i32_0 = arith.constant 0 : i32
    %c0_i32_1 = arith.constant 0 : i32
    return %c0_i32, %c0_i32_0 : i32, i32
  }
  func.func @transform_5(%arg0: i32) -> (i32, i32) {
    %c0_i32 = arith.constant 0 : i32
    %c0_i32_0 = arith.constant 0 : i32
    %c0_i32_1 = arith.constant 0 : i32
    return %c0_i32, %c0_i32_0 : i32, i32
  }
  func.func @transform_6(%arg0: i32) -> (i32, i32) {
    %c0_i32 = arith.constant 0 : i32
    %c0_i32_0 = arith.constant 0 : i32
    %c0_i32_1 = arith.constant 0 : i32
    return %c0_i32, %c0_i32_0 : i32, i32
  }
  func.func @transform_7(%arg0: i32) -> (i32, i32) {
    %c0_i32 = arith.constant 0 : i32
    %c0_i32_0 = arith.constant 0 : i32
    %c0_i32_1 = arith.constant 0 : i32
    return %c0_i32, %c0_i32_0 : i32, i32
  }
  func.func @transform_8(%arg0: i32) -> (i32, i32) {
    %c0_i32 = arith.constant 0 : i32
    %c0_i32_0 = arith.constant 0 : i32
    %c0_i32_1 = arith.constant 0 : i32
    return %c0_i32, %c0_i32_0 : i32, i32
  }
  func.func @transform_9(%arg0: i32) -> (i32, i32) {
    %c0_i32 = arith.constant 0 : i32
    %c0_i32_0 = arith.constant 0 : i32
    return %arg0, %c0_i32 : i32, i32
  }
}

</mosaic_0001>

<bundles_post_ra>
// kernel: tpu_custom_call.1
= control target key start
LH: loop header
LB: loop body
LE: loop exit
PB: predicated region body
PF: predicated region fallthrough
CT: control target
= control target key end

     0   :  { %14 = vsyncpa [#allocation3], 0  ;;  %s878_s0 = inlined_call_operand.vmem [shape: f32[8,2], index: 0, kind: input, shape index: {}]   ;;  %s879_s1 = inlined_call_operand.vmem [shape: f32[2,128], index: 1, kind: input, shape index: {}]   ;;  %s880_s2 = inlined_call_operand.vmem [shape: f32[1,128], index: 2, kind: input, shape index: {}]   ;;  %s881_s3 = inlined_call_operand.hbm [shape: bf16[128,128], index: 3, kind: input, shape index: {}]   ;;  %s882_s4 = inlined_call_operand.vmem [shape: f32[1,128], index: 4, kind: input, shape index: {}]   ;;  %s883_s5 = inlined_call_operand.hbm [shape: bf16[128,128], index: 5, kind: input, shape index: {}]   ;;  %s884_s6 = inlined_call_operand.vmem [shape: f32[1,128], index: 6, kind: input, shape index: {}]   ;;  %s885_s7 = inlined_call_operand.hbm [shape: bf16[128,128], index: 7, kind: input, shape index: {}]   ;;  %s886_s8 = inlined_call_operand.vmem [shape: f32[1,128], index: 8, kind: input, shape index: {}]   ;;  %s887_s9 = inlined_call_operand.hbm [shape: f32[8,128], index: 9, kind: output, shape index: {}]  }
   0x1   :  { %15 = vsyncpa [#allocation6], 0 }
   0x2   :  { %16 = vsyncpa [#allocation4], 0  ;;  %s706_s30 = smov [#allocation5]   ;;  %s707_s11 = smov [#allocation2]  }
   0x3   :  { %s42_s10 = sshll.u32 %s706_s30, 4  ;;  %s28_s12 = sshll.u32 %s707_s11, 4  ;;  %s43_s10 = int_to_ptr.vmem [resolvable:$true] %s42_s10  ;;  %s766_s12 = int_to_ptr.vmem [resolvable:$true] %s28_s12 }
   0x4   :  { %s612_s15 = scalar_lea.hbm %s883_s5, 1024 }
   0x5   :  { %p613_p0 = scmp.ne.s32.totalorder %s883_s5, %s612_s15  ;;  %p616_p1 = scmp.lt.u32.totalorder %s612_s15, %s883_s5 }
   0x7   :  { %p618_p2 = pnand %p616_p1, %p613_p0 }
   0x9   :  { %621 = shalt.err (!%p618_p2)
}
   0xa   :  { %s622_s20 = scalar_lea.vmem %s43_s10, 1024  ;;  %p627_p4 = scmp.lt.s32.totalorder %s43_s10, %s43_s10 }
   0xb   :  { %p623_p3 = scmp.ne.s32.totalorder %s43_s10, %s622_s20  ;;  %p628_p5 = scmp.lt.s32.totalorder %s622_s20, %s622_s20 }
   0xd   :  { %p629_p6 = por %p628_p5, %p627_p4 }
   0xf   :  { %p630_p7 = pnand %p629_p6, %p623_p3 }
  0x11   :  { %633 = shalt.err (!%p630_p7)
}
  0x12   :  { %s708_s21 = smov 64   ;;  %s709_s22 = smov 4  }
  0x13   :  { %48 = dma.hbm_to_vmem [thread:$0]  %s883_s5, 1024, %s43_s10, [#allocation6], %s708_s21, %s708_s21, %s709_s22  }
  0x14   :  { %s634_s27 = scalar_lea.hbm %s881_s3, 1024 }
  0x15   :  { %p635_p8 = scmp.ne.s32.totalorder %s881_s3, %s634_s27  ;;  %p638_p9 = scmp.lt.u32.totalorder %s634_s27, %s881_s3 }
  0x17   :  { %p640_p10 = pnand %p638_p9, %p635_p8 }
  0x19   :  { %643 = shalt.err (!%p640_p10)
}
  0x1a   :  { %s644_s13 = scalar_lea.vmem %s766_s12, 1024  ;;  %p649_p12 = scmp.lt.s32.totalorder %s766_s12, %s766_s12 }
  0x1b   :  { %p645_p11 = scmp.ne.s32.totalorder %s766_s12, %s644_s13  ;;  %p650_p13 = scmp.lt.s32.totalorder %s644_s13, %s644_s13 }
  0x1d   :  { %p651_p0 = por %p650_p13, %p649_p12 }
  0x1f   :  { %p652_p1 = pnand %p651_p0, %p645_p11 }
  0x21   :  { %655 = shalt.err (!%p652_p1)
}
  0x22   :  { %34 = dma.hbm_to_vmem [thread:$0]  %s881_s3, 1024, %s766_s12, [#allocation3], %s708_s21, %s708_s21, %s709_s22  }
  0x23   :  { %s710_s14 = smov [#allocation7]   ;;  %s656_s18 = scalar_lea.hbm %s885_s7, 1024 }
  0x24   :  { %s56_s15 = sshll.u32 %s710_s14, 4  ;;  %p657_p2 = scmp.ne.s32.totalorder %s885_s7, %s656_s18  ;;  %s57_s15 = int_to_ptr.vmem [resolvable:$true] %s56_s15 }
  0x25   :  { %p660_p3 = scmp.lt.u32.totalorder %s656_s18, %s885_s7 }
  0x27   :  { %p662_p4 = pnand %p660_p3, %p657_p2 }
  0x29   :  { %665 = shalt.err (!%p662_p4)
}
  0x2a   :  { %s666_s25 = scalar_lea.vmem %s57_s15, 1024  ;;  %p671_p6 = scmp.lt.s32.totalorder %s57_s15, %s57_s15 }
  0x2b   :  { %p667_p5 = scmp.ne.s32.totalorder %s57_s15, %s666_s25  ;;  %p672_p7 = scmp.lt.s32.totalorder %s666_s25, %s666_s25 }
  0x2d   :  { %p673_p8 = por %p672_p7, %p671_p6 }
  0x2f   :  { %p674_p9 = pnand %p673_p8, %p667_p5 }
  0x31   :  { %677 = shalt.err (!%p674_p9)
}
  0x32   :  { %62 = dma.hbm_to_vmem [thread:$0]  %s885_s7, 1024, %s57_s15, [#allocation6], %s708_s21, %s708_s21, %s709_s22  }
  0x33   :  { %700 = dma.done.wait [#allocation3], 1024  }
  0x34   :  { %701 = vsyncadd [#allocation3], 4294966272 }
  0x35   :  { %702 = dma.done.wait [#allocation6], 2048  }
  0x36   :  { %703 = vsyncadd [#allocation6], 4294965248  ;;  %v711_v0 = vmov 0   ;;  %v712_v1 = vmov 0.0   ;;  %v76_v2 = vld [vmem:[%s878_s0] sm:$0xff]  ;;  %v588_v3 = vld [vmem:[#allocation2] sm:$0xff]   ;;  %v82_v18 = vlaneseq }
  0x37   :  { %586 = vset.pattern.permute.xlu0 %v711_v0  ;;  %516 = vmatprep.subr.bf16.mxu0 %v712_v1  ;;  %v589_v4 = vld [vmem:[#allocation2 + $0x8] sm:$0xff]   ;;  %v713_v5 = vmov 1   ;;  %v590_v6 = vld [vmem:[#allocation2 + $0x10] sm:$0xff]   ;;  %v591_v7 = vld [vmem:[#allocation2 + $0x18] sm:$0xff]   ;;  %vm714_vm0 = vmmov 0   ;;  %s715_s11 = smov [#allocation8]  }
  0x38   :  { %536 = vmatprep.subr.bf16.mxu1 %v712_v1  ;;  %79 = vperm.xlu0 %586, %v76_v2   ;;  %v592_v8 = vld [vmem:[#allocation2 + $0x20] sm:$0xff]   ;;  %v593_v10 = vld [vmem:[#allocation2 + $0x28] sm:$0xff]   ;;  %v598_v12 = vld [vmem:[#allocation5 + $0x10] sm:$0xff]   ;;  %v83_v19 = vshrl.u32 %v82_v18, 7  ;;  %s451_s13 = sshll.u32 %s715_s11, 4  ;;  %s452_s13 = int_to_ptr.vmem [resolvable:$true] %s451_s13 }
  0x39   :  { %517 = vmatpush3.bf16.msra.mxu0 %v588_v3  ;;  %532 = vmatprep.mubr.msk.bf16.mxu0 %vm714_vm0, %v712_v1  ;;  %v596_v9 = vld [vmem:[#allocation5] sm:$0xff]   ;;  %v597_v11 = vld [vmem:[#allocation5 + $0x8] sm:$0xff]   ;;  %v594_v13 = vld [vmem:[#allocation2 + $0x30] sm:$0xff]   ;;  %p683_p11 = scmp.lt.s32.totalorder %s452_s13, %s452_s13 }
  0x3a   :  { %518 = vmatprep.subr.bf16.mxu0 %v712_v1  ;;  %552 = vmatprep.mubr.msk.bf16.mxu1 %vm714_vm0, %v712_v1  ;;  %v599_v14 = vld [vmem:[#allocation5 + $0x18] sm:$0xff]   ;;  %v600_v16 = vld [vmem:[#allocation5 + $0x20] sm:$0xff]   ;;  %v601_v17 = vld [vmem:[#allocation5 + $0x28] sm:$0xff]   ;;  %v84_v20 = vsub.s32 0, %v83_v19  ;;  %v93_v21 = vsub.s32 1, %v83_v19 }
  0x3b   :  { %537 = vmatpush3.bf16.msra.mxu1 %v596_v9  ;;  %v595_v15 = vld [vmem:[#allocation2 + $0x38] sm:$0xff]   ;;  %v75_v22 = vld [vmem:[%s879_s1] sm:$0x3]  ;;  %v604_v36 = vld [vmem:[#allocation7] sm:$0xff]  }
  0x3c   :  { %587 = vset.pattern.permute.xlu0 %v713_v5  ;;  %538 = vmatprep.subr.bf16.mxu1 %v712_v1  ;;  %v85_v24 = vrot.slane %v75_v22, %v84_v20  ;;  %v94_v25 = vrot.slane %v75_v22, %v93_v21  ;;  %v461_v29 = vld [vmem:[%s880_s2] ss:$0 sm:$0xff]  ;;  %v603_v35 = vld [vmem:[#allocation5 + $0x38] sm:$0xff]   ;;  %v605_v37 = vld [vmem:[#allocation7 + $0x8] sm:$0xff]  }
  0x3d   :  { %88 = vperm.xlu0 %587, %v76_v2   ;;  %519 = vmatpush3.bf16.msra.mxu0 %v589_v4  ;;  %v602_v34 = vld [vmem:[#allocation5 + $0x30] sm:$0xff]   ;;  %v607_v39 = vld [vmem:[#allocation7 + $0x18] sm:$0xff]   ;;  %v608_v40 = vld [vmem:[#allocation7 + $0x20] sm:$0xff]  }
  0x3e   :  { %520 = vmatprep.subr.bf16.mxu0 %v712_v1  ;;  %v606_v38 = vld [vmem:[#allocation7 + $0x10] sm:$0xff]   ;;  %v609_v41 = vld [vmem:[#allocation7 + $0x28] sm:$0xff]   ;;  %v611_v51 = vld [vmem:[#allocation7 + $0x38] sm:$0xff]  }
  0x3f   :  { %539 = vmatpush3.bf16.msra.mxu1 %v597_v11  ;;  %v462_v42 = vld [vmem:[%s882_s4] ss:$0 sm:$0xff] }
  0x40   :  { %540 = vmatprep.subr.bf16.mxu1 %v712_v1  ;;  %v610_v50 = vld [vmem:[#allocation7 + $0x30] sm:$0xff]  }
  0x41   :  { %521 = vmatpush3.bf16.msra.mxu0 %v590_v6  ;;  %v471_v52 = vld [vmem:[%s884_s6] ss:$0 sm:$0xff]  ;;  %s678_s6 = scalar_lea.vmem %s452_s13, 128 }
  0x42   :  { %522 = vmatprep.subr.bf16.mxu0 %v712_v1  ;;  %v480_v60 = vld [vmem:[%s886_s8] ss:$0 sm:$0xff]  ;;  %p679_p10 = scmp.ne.s32.totalorder %s452_s13, %s678_s6  ;;  %p684_p12 = scmp.lt.s32.totalorder %s678_s6, %s678_s6 }
  0x43   :  { %541 = vmatpush3.bf16.msra.mxu1 %v598_v12 }
  0x44   :  { %542 = vmatprep.subr.bf16.mxu1 %v712_v1  ;;  %p685_p13 = por %p684_p12, %p683_p11 }
  0x45   :  { %523 = vmatpush3.bf16.msra.mxu0 %v591_v7 }
  0x46   :  { %524 = vmatprep.subr.bf16.mxu0 %v712_v1  ;;  %p686_p0 = pnand %p685_p13, %p679_p10 }
  0x47   :  { %543 = vmatpush3.bf16.msra.mxu1 %v599_v14 }
  0x48   :  { %544 = vmatprep.subr.bf16.mxu1 %v712_v1 }
  0x49   :  { %525 = vmatpush3.bf16.msra.mxu0 %v592_v8 }
  0x4a   :  { %526 = vmatprep.subr.bf16.mxu0 %v712_v1 }
  0x4b   :  { %545 = vmatpush3.bf16.msra.mxu1 %v600_v16 }
  0x4c   :  { %546 = vmatprep.subr.bf16.mxu1 %v712_v1 }
  0x4d   :  { %527 = vmatpush3.bf16.msra.mxu0 %v593_v10 }
  0x4e   :  { %528 = vmatprep.subr.bf16.mxu0 %v712_v1 }
  0x4f   :  { %547 = vmatpush3.bf16.msra.mxu1 %v601_v17 }
  0x50   :  { %548 = vmatprep.subr.bf16.mxu1 %v712_v1 }
  0x51   :  { %529 = vmatpush3.bf16.msra.mxu0 %v594_v13 }
  0x52   :  { %530 = vmatprep.subr.bf16.mxu0 %v712_v1 }
  0x53   :  { %549 = vmatpush3.bf16.msra.mxu1 %v602_v34 }
  0x54   :  { %550 = vmatprep.subr.bf16.mxu1 %v712_v1 }
  0x55   :  { %531 = vmatpush3.bf16.msra.mxu0 %v595_v15 }
  0x56   :  { %556 = vmatprep.subr.bf16.mxu0 %v712_v1 }
  0x57   :  { %551 = vmatpush3.bf16.msra.mxu1 %v603_v35 }
  0xb7   :  { %v80_v23 = vpop.permute.xlu0 %79 }
  0xb8   :  { %v86_v27 = vmul.f32 %v85_v24, %v80_v23 }
  0xbc   :  { %v89_v26 = vpop.permute.xlu0 %88 }
  0xbd   :  { %v95_v28 = vmul.f32 %v94_v25, %v89_v26 }
  0xbf   :  { %v96_v30 = vadd.f32 %v95_v28, %v86_v27 }
  0xc1   :  { %v104_v31 = vadd.f32 %v461_v29, %v96_v30 }
  0xc3   :  { %v105_v32 = vmax.f32 %v104_v31, 0.0 }
  0xc5   :  { %v106_v33 = vpack.c.bf16 %v105_v32, %v105_v32 }
  0xc7   :  { %533 = vmatmul.mubr.bf16.vlgmr.msra.gmra.mrb[0].mxu0 %v106_v33 }
  0xc8   :  { %572 = vmatprep.mubr.msk.bf16.mxu0 %vm714_vm0, %v712_v1  ;;  %557 = vmatpush3.bf16.msra.mxu0 %v604_v36 }
  0xc9   :  { %558 = vmatprep.subr.bf16.mxu0 %v712_v1 }
  0xcc   :  { %559 = vmatpush3.bf16.msra.mxu0 %v605_v37 }
  0xcd   :  { %560 = vmatprep.subr.bf16.mxu0 %v712_v1 }
  0xd0   :  { %561 = vmatpush3.bf16.msra.mxu0 %v606_v38 }
  0xd1   :  { %562 = vmatprep.subr.bf16.mxu0 %v712_v1 }
  0xd4   :  { %563 = vmatpush3.bf16.msra.mxu0 %v607_v39 }
  0xd5   :  { %564 = vmatprep.subr.bf16.mxu0 %v712_v1 }
  0xd8   :  { %565 = vmatpush3.bf16.msra.mxu0 %v608_v40 }
  0xd9   :  { %566 = vmatprep.subr.bf16.mxu0 %v712_v1 }
  0xdc   :  { %567 = vmatpush3.bf16.msra.mxu0 %v609_v41 }
  0xdd   :  { %568 = vmatprep.subr.bf16.mxu0 %v712_v1 }
  0xe0   :  { %569 = vmatpush3.bf16.msra.mxu0 %v610_v50 }
  0xe1   :  { %570 = vmatprep.subr.bf16.mxu0 %v712_v1 }
  0xe4   :  { %571 = vmatpush3.bf16.msra.mxu0 %v611_v51 }
 0x19a   :  { %v212_v43 = vpop.f32.mrb[0].mxu0 }
 0x19b   :  { %v213_v44 = vadd.f32 %v462_v42, %v212_v43  ;;  %v534_v45 = vpop.f32.mrb[1].mxu0 }
 0x19c   :  { %v215_v46 = vpop.f32.mrb[2].mxu0 }
 0x19d   :  { %v218_v47 = vmax.f32 %v213_v44, 0.0  ;;  %v535_v48 = vpop.f32.mrb[3].mxu0 }
 0x19f   :  { %v219_v49 = vpack.c.bf16 %v218_v47, %v218_v47 }
 0x1a1   :  { %553 = vmatmul.mubr.bf16.vlgmr.msra.gmra.mrb[0].mxu1 %v219_v49 }
 0x274   :  { %v325_v53 = vpop.f32.mrb[0].mxu1 }
 0x275   :  { %v326_v54 = vadd.f32 %v471_v52, %v325_v53  ;;  %v554_v55 = vpop.f32.mrb[1].mxu1 }
 0x276   :  { %v328_v56 = vpop.f32.mrb[2].mxu1 }
 0x277   :  { %v331_v57 = vmax.f32 %v326_v54, 0.0  ;;  %v555_v58 = vpop.f32.mrb[3].mxu1 }
 0x279   :  { %v332_v59 = vpack.c.bf16 %v331_v57, %v331_v57 }
 0x27b   :  { %573 = vmatmul.mubr.bf16.vlgmr.msra.gmra.mrb[4].mxu0 %v332_v59 }
 0x34e   :  { %v438_v61 = vpop.f32.mrb[4].mxu0 }
 0x34f   :  { %v439_v62 = vadd.f32 %v480_v60, %v438_v61  ;;  %v574_v63 = vpop.f32.mrb[5].mxu0 }
 0x350   :  { %v441_v0 = vpop.f32.mrb[6].mxu0 }
 0x351   :  { %444 = vst [vmem:[#allocation8] sm:$0xff] %v439_v62  ;;  %v575_v1 = vpop.f32.mrb[7].mxu0 }
 0x352   :  { %689 = shalt.err (!%p686_p0)
}
 0x353   :  { %s690_s8 = scalar_lea.hbm %s887_s9, 128 }
 0x354   :  { %p691_p1 = scmp.ne.s32.totalorder %s887_s9, %s690_s8  ;;  %p694_p2 = scmp.lt.u32.totalorder %s690_s8, %s887_s9 }
 0x356   :  { %p696_p3 = pnand %p694_p2, %p691_p1 }
 0x358   :  { %699 = shalt.err (!%p696_p3)
}
 0x359   :  { %454 = dma.vmem_to_hbm [thread:$0]  %s452_s13, 128, %s887_s9, [#allocation4]  }
 0x35a   :  { %704 = dma.done.wait [#allocation4], 128  }
 0x35b   :  { %705 = vsyncadd [#allocation4], 4294967168 }
 0x35c   :  { %458 = vsyncpa [#allocation3], 1 }
 0x35d   :  { %459 = vsyncpa [#allocation6], 1 }
 0x35e   :  { %460 = vsyncpa [#allocation4], 1 }

</bundles_post_ra>
